<compile_context>
chip_gen: v5e
topology: v5e:2x2
jax: 0.10.0
libtpu: 0.0.40
codegen_flags: <defaults>
</compile_context>

<pallas_src>
import functools

import jax
import jax.numpy as jnp
from jax import lax
from jax.experimental import pallas as pl
from jax.experimental.pallas import tpu as pltpu


def _round_up(x, m):
    return -(-x // m) * m


# ---------------------------------------------------------------------------
# Pass 1: channel-max raw energy per sample + per-core running max-energy.
# Input viewed as (C, nrows, L); blocks (C, R_TILE, L) keep sublanes full.
# ---------------------------------------------------------------------------
def _stats_kernel(a_ref, emax_ref, maxp_ref):
    @pl.when(pl.program_id(1) == 0)
    def _init():
        maxp_ref[...] = jnp.zeros_like(maxp_ref)

    x = a_ref[...].astype(jnp.float32)                  # (C, R_TILE, L)
    e = jnp.max(x * x, axis=0)                          # (R_TILE, L) channel-max energy
    emax_ref[...] = e
    maxp_ref[...] = jnp.maximum(maxp_ref[...], jnp.max(e, keepdims=True))


# ---------------------------------------------------------------------------
# Pass 2: fused normalize + trim with a carried previous block.
#   Grid has nb+1 steps; step j fetches source block (onset//T_TILE)+j (clamped).
#   Step 0 only primes the carry; step j>=1 writes output block j-1:
#     out[:, l] = audio[:, onset + (j-1)*T_TILE + l] * (1/max|x|)   (0 beyond T)
# ---------------------------------------------------------------------------
def _trim_kernel(shift_ref, inv_ref, a_ref, out_ref, carry_ref, *, T, T_TILE):
    j = pl.program_id(0)

    @pl.when(j > 0)
    def _compute():
        b0 = shift_ref[0]                               # onset // T_TILE
        r = shift_ref[1]                                # onset %  T_TILE
        inv = inv_ref[0, 0]                             # 1 / max|x|
        prev = carry_ref[...]                           # source block b0 + j - 1
        cur = a_ref[...]                                # source block b0 + j (clamped)

        lane = lax.broadcasted_iota(jnp.int32, (1, T_TILE), 1)
        # Select first, then a single dynamic lane rotate (one XLU roll per tile).
        d = jnp.where(lane >= r, prev, cur)
        window = pltpu.roll(d, shift=(T_TILE - r) % T_TILE, axis=1)

        src = (b0 + (j - 1)) * T_TILE + r + lane        # global source index
        out_ref[...] = jnp.where(src < T,
                                 window.astype(jnp.float32) * inv,
                                 jnp.float32(0.0)).astype(out_ref.dtype)

    carry_ref[...] = a_ref[...]                         # becomes "prev" next step


# ---------------------------------------------------------------------------
# Layout / tile picking.
# ---------------------------------------------------------------------------
def _pick_layout(C, T):
    """Lane width L, rows/block, #blocks, padded rows for the (nrows, L) view."""
    L = 512 if T >= 8 * 512 else 128
    rows = -(-T // L)
    bytes_per_row = 4 * max(C, 1) * L
    # ~1.5 MiB of f32 per block, capped so the trim pass (in x2 + out x2 + carry
    # ~= 5 f32 blocks) stays well under the v5e 16 MiB scoped-VMEM default.
    target = max(8, (3 << 19) // bytes_per_row)
    cap = max(8, (12 << 20) // (5 * bytes_per_row))
    r_tgt = min(target, cap)
    n_blk = max(1, -(-rows // r_tgt))
    if n_blk > 1 and n_blk % 2:
        n_blk += 1                                      # even block count -> v7x dual-TC
    r_tile = _round_up(-(-rows // n_blk), 8)
    nrows = n_blk * r_tile
    return L, r_tile, n_blk, nrows


# ---------------------------------------------------------------------------
# Wrapper
# ---------------------------------------------------------------------------
def silence_remover(audio, start_threshold, end_threshold):
    """Returns (trimmed_zero_padded (C,T) f32, start, end, onset)."""
    C, T = audio.shape
    in_bytes = int(jnp.dtype(audio.dtype).itemsize)
    L, r_tile, n_blk, nrows = _pick_layout(C, T)
    T_pad = nrows * L
    if T_pad != T:
        audio = jnp.pad(audio, ((0, 0), (0, T_pad - T)))
    a3 = audio.reshape(C, nrows, L)

    NC = 2 if n_blk >= 2 else 1                         # leading parallel axis (v7x: 2 TCs)
    bpc = n_blk // NC

    # ---- pass 1: channel-max raw energy + per-core max-energy partials -----
    emax, max_part = pl.pallas_call(
        _stats_kernel,
        out_shape=(jax.ShapeDtypeStruct((nrows, L), jnp.float32),
                   jax.ShapeDtypeStruct((NC, 1), jnp.float32)),
        grid_spec=pltpu.PrefetchScalarGridSpec(
            num_scalar_prefetch=0,
            grid=(NC, bpc),
            in_specs=[pl.BlockSpec((C, r_tile, L),
                                   lambda i, j: (0, i * bpc + j, 0))],
            out_specs=(pl.BlockSpec((r_tile, L), lambda i, j: (i * bpc + j, 0)),
                       pl.BlockSpec((1, 1), lambda i, j: (i, 0)))),
        compiler_params=pltpu.CompilerParams(
            dimension_semantics=("parallel", "arbitrary")),
        cost_estimate=pl.CostEstimate(
            flops=3 * C * T_pad, transcendentals=0,
            bytes_accessed=C * T_pad * in_bytes + T_pad * 4 + NC * 4),
    )(a3)

    # ---- detection (tiny, plain XLA on the T-sized energy array) -----------
    max_e = jnp.maximum(jnp.max(max_part), jnp.float32(1e-30))     # max(audio^2)
    inv = (jnp.float32(1.0) / jnp.sqrt(max_e)).astype(jnp.float32)  # 1 / max|audio|
    idx = (jnp.arange(nrows, dtype=jnp.int32)[:, None] * L
           + jnp.arange(L, dtype=jnp.int32)[None, :])
    sentinel = jnp.int32(T)
    idx = jnp.where(idx < T, idx, sentinel)
    #   e >= thr * max_e   <=>   (x / max|x|)^2 >= thr   (up to ulps)
    start = jnp.min(jnp.where(emax >= jnp.float32(start_threshold) * max_e,
                              idx, sentinel))
    end = jnp.min(jnp.where(emax >= jnp.float32(end_threshold) * max_e,
                            idx, sentinel))
    onset = (start + end) // 2                          # == int((start + end) / 2)

    # ---- pass 2: fused normalize + trim -------------------------------------
    T_TILE = r_tile * L
    nb = T_pad // T_TILE                                # == n_blk
    shift = jnp.stack([onset // T_TILE, onset % T_TILE]).astype(jnp.int32)
    inv_arr = inv.reshape(1, 1)

    kern = functools.partial(_trim_kernel, T=T, T_TILE=T_TILE)
    trimmed_pad = pl.pallas_call(
        kern,
        out_shape=jax.ShapeDtypeStruct((C, T_pad), jnp.float32),
        grid_spec=pltpu.PrefetchScalarGridSpec(
            num_scalar_prefetch=1,
            grid=(nb + 1,),
            in_specs=[pl.BlockSpec(memory_space=pltpu.MemorySpace.SMEM),   # 1/max|x|
                      pl.BlockSpec((C, T_TILE),
                                   lambda j, s: (0, jnp.minimum(s[0] + j, nb - 1)))],
            out_specs=pl.BlockSpec((C, T_TILE),
                                   lambda j, s: (0, jnp.maximum(j - 1, 0))),
            scratch_shapes=[pltpu.VMEM((C, T_TILE), audio.dtype)]),
        compiler_params=pltpu.CompilerParams(dimension_semantics=("arbitrary",)),
        cost_estimate=pl.CostEstimate(
            flops=4 * C * T_pad, transcendentals=0,
            bytes_accessed=C * T_pad * (in_bytes + 4)),
    )(shift, inv_arr, audio)

    trimmed = trimmed_pad[:, :T] if T_pad != T else trimmed_pad
    return trimmed, start, end, onset


# ---------------------------------------------------------------------------
# Pure-JAX reference (spec semantics) for the sanity check.
# ---------------------------------------------------------------------------
def _reference(audio, start_threshold, end_threshold):
    audio = audio.astype(jnp.float32)
    an = audio / jnp.max(jnp.abs(audio))
    e = jnp.max(an * an, axis=0)
    T = e.shape[0]
    idx = jnp.arange(T, dtype=jnp.int32)
    start = jnp.min(jnp.where(e >= start_threshold, idx, T))
    end = jnp.min(jnp.where(e >= end_threshold, idx, T))
    onset = (start + end) // 2
    padded = jnp.concatenate([an, jnp.zeros_like(an)], axis=1)
    trimmed = lax.dynamic_slice(
        padded, (jnp.int32(0), onset.astype(jnp.int32)), audio.shape)
    return trimmed, start, end, onset


if __name__ == "__main__":
    key = jax.random.PRNGKey(0)
    C, T = 2, 2048
    start_threshold, end_threshold = 0.01, 0.3

    # Deterministic synthetic "audio": low-level noise + a sine burst starting at t=700.
    t = jnp.arange(T, dtype=jnp.float32)
    burst = jnp.where(t >= 700.0, jnp.sin(0.3 * t), 0.0)                 # (T,)
    noise = 1e-3 * jax.random.normal(key, (C, T), dtype=jnp.float32)
    gains = jnp.array([[1.0], [0.8]], dtype=jnp.float32)                 # per-channel gain
    audio = noise + gains * burst[None, :]                               # (C, T)

    fn = jax.jit(functools.partial(
        silence_remover, start_threshold=start_threshold,
        end_threshold=end_threshold))
    trimmed, start, end, onset = fn(audio)
    jax.block_until_ready((trimmed, start, end, onset))

    # sanity check against pure-JAX reference
    ref_trimmed, ref_start, ref_end, ref_onset = _reference(
        audio, start_threshold, end_threshold)
    assert int(start) == int(ref_start), (int(start), int(ref_start))
    assert int(end) == int(ref_end), (int(end), int(ref_end))
    assert int(onset) == int(ref_onset), (int(onset), int(ref_onset))
    assert trimmed.shape == (C, T), trimmed.shape
    assert jnp.allclose(trimmed, ref_trimmed, atol=1e-5, rtol=1e-5)

    print("KERNEL_OK")
</pallas_src>

<mosaic_0001>
module attributes {stable_mosaic.version = 11 : i64} {
  func.func @_trim_kernel(%arg0: i32, %arg1: memref<2xi32, #tpu.memory_space<smem>>, %arg2: memref<1x1xf32, #tpu.memory_space<smem>>, %arg3: memref<2x2048xf32, #tpu.memory_space<vmem>>, %arg4: memref<2x2048xf32, #tpu.memory_space<vmem>>, %arg5: memref<2x2048xf32, #tpu.memory_space<vmem>>) attributes {dimension_semantics = [#tpu.dimension_semantics<arbitrary>], iteration_bounds = array<i64: 2>, scalar_prefetch = 1 : i64, scratch_operands = 1 : i64, tpu.core_type = #tpu.core_type<tc>, window_params = [{transform_indices = @transform_0, window_bounds = array<i64: 1, 1>}, {transform_indices = @transform_1, window_bounds = array<i64: 2, 2048>}, {transform_indices = @transform_2, window_bounds = array<i64: 2, 2048>}]} {
    %c0_i32 = arith.constant 0 : i32
    %0 = arith.cmpi sgt, %arg0, %c0_i32 : i32
    %1 = arith.extui %0 : i1 to i32
    %c0_i32_0 = arith.constant 0 : i32
    %2 = arith.cmpi ne, %1, %c0_i32_0 : i32
    scf.if %2 {
      %c0_4 = arith.constant 0 : index
      %5 = memref.load %arg1[%c0_4] : memref<2xi32, #tpu.memory_space<smem>>
      %c1 = arith.constant 1 : index
      %6 = memref.load %arg1[%c1] : memref<2xi32, #tpu.memory_space<smem>>
      %c0_5 = arith.constant 0 : index
      %c0_6 = arith.constant 0 : index
      %7 = memref.load %arg2[%c0_5, %c0_6] : memref<1x1xf32, #tpu.memory_space<smem>>
      %c0_7 = arith.constant 0 : index
      %c0_8 = arith.constant 0 : index
      %8 = vector.load %arg5[%c0_7, %c0_8] : memref<2x2048xf32, #tpu.memory_space<vmem>>, vector<2x2048xf32>
      %c0_9 = arith.constant 0 : index
      %c0_10 = arith.constant 0 : index
      %9 = vector.load %arg3[%c0_9, %c0_10] : memref<2x2048xf32, #tpu.memory_space<vmem>>, vector<2x2048xf32>
      %10 = tpu.iota {dimensions = array<i32: 1>} : vector<1x2048xi32>
      %11 = vector.broadcast %6 : i32 to vector<1x2048xi32>
      %12 = arith.cmpi sge, %10, %11 : vector<1x2048xi32>
      %13 = vector.shape_cast %12 : vector<1x2048xi1> to vector<1x2048xi1>
      %14 = vector.broadcast %13 : vector<1x2048xi1> to vector<2x2048xi1>
      %15 = arith.select %14, %8, %9 : vector<2x2048xi1>, vector<2x2048xf32>
      %c2048_i32 = arith.constant 2048 : i32
      %16 = arith.subi %c2048_i32, %6 : i32
      %c2048_i32_11 = arith.constant 2048 : i32
      %c0_i32_12 = arith.constant 0 : i32
      %17 = arith.cmpi eq, %c2048_i32_11, %c0_i32_12 : i32
      %c1_i32 = arith.constant 1 : i32
      %18 = arith.select %17, %c1_i32, %c2048_i32_11 : i32
      %19 = arith.remsi %16, %18 : i32
      %c0_i32_13 = arith.constant 0 : i32
      %20 = arith.cmpi ne, %19, %c0_i32_13 : i32
      %c0_i32_14 = arith.constant 0 : i32
      %21 = arith.cmpi slt, %19, %c0_i32_14 : i32
      %c0_i32_15 = arith.constant 0 : i32
      %22 = arith.cmpi slt, %18, %c0_i32_15 : i32
      %23 = arith.xori %21, %22 : i1
      %24 = arith.andi %23, %20 : i1
      %25 = arith.addi %19, %18 : i32
      %26 = arith.select %24, %25, %19 : i32
      %27 = tpu.dynamic_rotate %15 by %26 dim 1 : vector<2x2048xf32>, i32 -> vector<2x2048xf32>
      %c1_i32_16 = arith.constant 1 : i32
      %28 = arith.subi %arg0, %c1_i32_16 : i32
      %29 = arith.addi %5, %28 : i32
      %c2048_i32_17 = arith.constant 2048 : i32
      %30 = arith.muli %29, %c2048_i32_17 : i32
      %31 = arith.addi %30, %6 : i32
      %32 = vector.broadcast %31 : i32 to vector<1x2048xi32>
      %33 = arith.addi %32, %10 : vector<1x2048xi32>
      %c2048_i32_18 = arith.constant 2048 : i32
      %34 = vector.broadcast %c2048_i32_18 : i32 to vector<1x2048xi32>
      %35 = arith.cmpi slt, %33, %34 : vector<1x2048xi32>
      %36 = vector.broadcast %7 : f32 to vector<2x2048xf32>
      %37 = arith.mulf %27, %36 : vector<2x2048xf32>
      %cst = arith.constant 0.000000e+00 : f32
      %38 = vector.shape_cast %35 : vector<1x2048xi1> to vector<1x2048xi1>
      %39 = vector.broadcast %38 : vector<1x2048xi1> to vector<2x2048xi1>
      %40 = vector.broadcast %cst : f32 to vector<2x2048xf32>
      %41 = arith.select %39, %37, %40 : vector<2x2048xi1>, vector<2x2048xf32>
      %c0_19 = arith.constant 0 : index
      %c0_20 = arith.constant 0 : index
      %42 = vector.load %arg4[%c0_19, %c0_20] : memref<2x2048xf32, #tpu.memory_space<vmem>>, vector<2x2048xf32>
      tpu.vector_store %arg4[%c0_19, %c0_20], %41 {strides = array<i32>} : memref<2x2048xf32, #tpu.memory_space<vmem>>, vector<2x2048xf32>,
    } else {
    }
    %c0 = arith.constant 0 : index
    %c0_1 = arith.constant 0 : index
    %3 = vector.load %arg3[%c0, %c0_1] : memref<2x2048xf32, #tpu.memory_space<vmem>>, vector<2x2048xf32>
    %c0_2 = arith.constant 0 : index
    %c0_3 = arith.constant 0 : index
    %4 = vector.load %arg5[%c0_2, %c0_3] : memref<2x2048xf32, #tpu.memory_space<vmem>>, vector<2x2048xf32>
    tpu.vector_store %arg5[%c0_2, %c0_3], %3 {strides = array<i32>} : memref<2x2048xf32, #tpu.memory_space<vmem>>, vector<2x2048xf32>,
    return
  }
  func.func @transform_0(%arg0: i32, %arg1: memref<2xi32, #tpu.memory_space<smem>>) -> (i32, i32) {
    %c0_i32 = arith.constant 0 : i32
    %c0_i32_0 = arith.constant 0 : i32
    %c0_i32_1 = arith.constant 0 : i32
    return %c0_i32, %c0_i32_0 : i32, i32
  }
  func.func @transform_1(%arg0: i32, %arg1: memref<2xi32, #tpu.memory_space<smem>>) -> (i32, i32) {
    %c0 = arith.constant 0 : index
    %0 = memref.load %arg1[%c0] : memref<2xi32, #tpu.memory_space<smem>>
    %1 = arith.addi %0, %arg0 : i32
    %c0_i32 = arith.constant 0 : i32
    %2 = arith.minsi %1, %c0_i32 : i32
    %c0_i32_0 = arith.constant 0 : i32
    %c0_i32_1 = arith.constant 0 : i32
    return %c0_i32_0, %2 : i32, i32
  }
  func.func @transform_2(%arg0: i32, %arg1: memref<2xi32, #tpu.memory_space<smem>>) -> (i32, i32) {
    %c1_i32 = arith.constant 1 : i32
    %0 = arith.subi %arg0, %c1_i32 : i32
    %c0_i32 = arith.constant 0 : i32
    %1 = arith.maxsi %0, %c0_i32 : i32
    %c0_i32_0 = arith.constant 0 : i32
    %c0_i32_1 = arith.constant 0 : i32
    return %c0_i32_0, %1 : i32, i32
  }
}

module attributes {stable_mosaic.version = 11 : i64} {
  func.func @_stats_kernel(%arg0: i32, %arg1: i32, %arg2: memref<2x16x128xf32, #tpu.memory_space<vmem>>, %arg3: memref<16x128xf32, #tpu.memory_space<vmem>>, %arg4: memref<1x1xf32, #tpu.memory_space<vmem>>) attributes {dimension_semantics = [#tpu.dimension_semantics<parallel>, #tpu.dimension_semantics<arbitrary>], iteration_bounds = array<i64: 1, 1>, scalar_prefetch = 0 : i64, scratch_operands = 0 : i64, tpu.core_type = #tpu.core_type<tc>, window_params = [{transform_indices = @transform_0, window_bounds = array<i64: 2, 16, 128>}, {transform_indices = @transform_1, window_bounds = array<i64: 16, 128>}, {transform_indices = @transform_2, window_bounds = array<i64: 1, 1>}]} {
    %c0_i32 = arith.constant 0 : i32
    %0 = arith.cmpi eq, %arg1, %c0_i32 : i32
    %1 = arith.extui %0 : i1 to i32
    %c0_i32_0 = arith.constant 0 : i32
    %2 = arith.cmpi ne, %1, %c0_i32_0 : i32
    scf.if %2 {
      %cst_10 = arith.constant 0.000000e+00 : f32
      %15 = vector.broadcast %cst_10 : f32 to vector<1x1xf32>
      %c0_11 = arith.constant 0 : index
      %c0_12 = arith.constant 0 : index
      %16 = vector.load %arg4[%c0_11, %c0_12] : memref<1x1xf32, #tpu.memory_space<vmem>>, vector<1x1xf32>
      tpu.vector_store %arg4[%c0_11, %c0_12], %15 {strides = array<i32>} : memref<1x1xf32, #tpu.memory_space<vmem>>, vector<1x1xf32>,
    } else {
    }
    %c0 = arith.constant 0 : index
    %c0_1 = arith.constant 0 : index
    %c0_2 = arith.constant 0 : index
    %3 = vector.load %arg2[%c0, %c0_1, %c0_2] : memref<2x16x128xf32, #tpu.memory_space<vmem>>, vector<2x16x128xf32>
    %4 = arith.mulf %3, %3 : vector<2x16x128xf32>
    %cst = arith.constant dense<0xFF800000> : vector<16x128xf32>
    %5 = vector.multi_reduction <maximumf>, %4, %cst [0] : vector<2x16x128xf32> to vector<16x128xf32>
    %c0_3 = arith.constant 0 : index
    %c0_4 = arith.constant 0 : index
    %6 = vector.load %arg3[%c0_3, %c0_4] : memref<16x128xf32, #tpu.memory_space<vmem>>, vector<16x128xf32>
    tpu.vector_store %arg3[%c0_3, %c0_4], %5 {strides = array<i32>} : memref<16x128xf32, #tpu.memory_space<vmem>>, vector<16x128xf32>,
    %c0_5 = arith.constant 0 : index
    %c0_6 = arith.constant 0 : index
    %7 = vector.load %arg4[%c0_5, %c0_6] : memref<1x1xf32, #tpu.memory_space<vmem>>, vector<1x1xf32>
    %8 = vector.shape_cast %5 : vector<16x128xf32> to vector<1x16x128xf32>
    %cst_7 = arith.constant dense<0xFF800000> : vector<1xf32>
    %9 = vector.multi_reduction <maximumf>, %8, %cst_7 [1, 2] : vector<1x16x128xf32> to vector<1xf32>
    %10 = vector.shape_cast %9 : vector<1xf32> to vector<1x1x1xf32>
    %11 = vector.extract %10[0, 0, 0] : f32 from vector<1x1x1xf32>
    %12 = vector.broadcast %11 : f32 to vector<1x1xf32>
    %13 = arith.maximumf %7, %12 : vector<1x1xf32>
    %c0_8 = arith.constant 0 : index
    %c0_9 = arith.constant 0 : index
    %14 = vector.load %arg4[%c0_8, %c0_9] : memref<1x1xf32, #tpu.memory_space<vmem>>, vector<1x1xf32>
    tpu.vector_store %arg4[%c0_8, %c0_9], %13 {strides = array<i32>} : memref<1x1xf32, #tpu.memory_space<vmem>>, vector<1x1xf32>,
    return
  }
  func.func @transform_0(%arg0: i32, %arg1: i32) -> (i32, i32, i32) {
    %c1_i32 = arith.constant 1 : i32
    %0 = arith.muli %arg0, %c1_i32 : i32
    %1 = arith.addi %0, %arg1 : i32
    %c0_i32 = arith.constant 0 : i32
    %c0_i32_0 = arith.constant 0 : i32
    %c0_i32_1 = arith.constant 0 : i32
    return %c0_i32, %1, %c0_i32_0 : i32, i32, i32
  }
  func.func @transform_1(%arg0: i32, %arg1: i32) -> (i32, i32) {
    %c1_i32 = arith.constant 1 : i32
    %0 = arith.muli %arg0, %c1_i32 : i32
    %1 = arith.addi %0, %arg1 : i32
    %c0_i32 = arith.constant 0 : i32
    %c0_i32_0 = arith.constant 0 : i32
    return %1, %c0_i32 : i32, i32
  }
  func.func @transform_2(%arg0: i32, %arg1: i32) -> (i32, i32) {
    %c0_i32 = arith.constant 0 : i32
    %c0_i32_0 = arith.constant 0 : i32
    return %arg0, %c0_i32 : i32, i32
  }
}

</mosaic_0001>

<bundles_post_ra>
// kernel: silence_remover.2
= control target key start
LH: loop header
LB: loop body
LE: loop exit
PB: predicated region body
PF: predicated region fallthrough
CT: control target
= control target key end

     0   :  { %s198_s0 = inlined_call_operand.vmem [shape: f32[2,16,128], index: 0, kind: input, shape index: {}]   ;;  %s199_s1 = inlined_call_operand.vmem [shape: f32[16,128], index: 1, kind: output, shape index: {0}]   ;;  %s200_s2 = inlined_call_operand.hbm [shape: f32[1,1], index: 2, kind: output, shape index: {1}]  }
   0x1   :  { %v53_v0 = vld [vmem:[%s198_s0] sm:$0xff]  ;;  %v54_v1 = vld [vmem:[%s198_s0 + $0x8] sm:$0xff]  ;;  %v55_v2 = vld [vmem:[%s198_s0 + $0x10] sm:$0xff] }
   0x2   :  { %v56_v3 = vld [vmem:[%s198_s0 + $0x18] sm:$0xff]  ;;  %v57_v4 = vmul.f32 %v53_v0, %v53_v0  ;;  %v58_v5 = vmul.f32 %v54_v1, %v54_v1  ;;  %v59_v6 = vmul.f32 %v55_v2, %v55_v2 }
   0x3   :  { %8 = vsyncpa [#allocation3], 0  ;;  %v60_v7 = vmul.f32 %v56_v3, %v56_v3  ;;  %vm51_vm0 = vcmask 0   ;;  %v158_v11 = vmov 0.0   ;;  %s159_s0 = smov [#allocation2]  }
   0x4   :  { %v61_v8 = vmax.f32 %v57_v4, %v59_v6  ;;  %52 = vst.msk [vmem:[#allocation2] sm:$0x1] %vm51_vm0, %v158_v11  ;;  %s95_s21 = sshll.u32 %s159_s0, 4  ;;  %s96_s21 = int_to_ptr.vmem [resolvable:$true] %s95_s21 }
   0x5   :  { %v62_v9 = vmax.f32 %v58_v5, %v60_v7 }
   0x6   :  { %63 = vst [vmem:[%s199_s1] sm:$0xff] %v61_v8 }
   0x7   :  { %64 = vst [vmem:[%s199_s1 + $0x8] sm:$0xff] %v62_v9  ;;  %v66_v10 = vmax.f32 %v61_v8, %v62_v9  ;;  %s97_s1 = sshll.u32 %s200_s2, 4  ;;  %s98_s1 = int_to_ptr.hbm [resolvable:$true] %s97_s1 }
   0x9   :  { %67 = vmax.xlane.f32.xlu0 %v66_v10 }
   0xb   :  { %v65_v19 = vld [vmem:[#allocation2] sm:$0x1] }
  0x7c   :  { %v68_v12 = vpop.xlane.xlu0 %67 }
  0x7d   :  { %v69_v13 = vrot.slane %v68_v12, 4 }
  0x7f   :  { %v70_v14 = vmax.f32 %v68_v12, %v69_v13 }
  0x81   :  { %v71_v15 = vrot.slane %v70_v14, 2 }
  0x83   :  { %v72_v16 = vmax.f32 %v70_v14, %v71_v15 }
  0x85   :  { %v73_v17 = vrot.slane %v72_v16, 1 }
  0x87   :  { %v74_v18 = vmax.f32 %v72_v16, %v73_v17 }
  0x89   :  { %128 = vpush %v74_v18 }
  0xba   :  { %s129_s24 = spop %128 }
  0xbb   :  { %v76_v20 = vstv %s129_s24 }
  0xbc   :  { %v77_v21 = vmax.f32 %v65_v19, %v76_v20 }
  0xbe   :  { %79 = vst.msk [vmem:[#allocation2] sm:$0x1] %vm51_vm0, %v77_v21 }
  0xbf   :  { %100 = dma.vmem_to_hbm [thread:$0]  %s96_s21, 16, %s98_s1, [#allocation3]  }
  0xc0   :  { %156 = dma.done.wait [#allocation3], 16  }
  0xc1   :  { %157 = vsyncadd [#allocation3], 4294967280 }
  0xc2   :  { %113 = vsyncpa [#allocation3], 1 }

// kernel: silence_remover.3
= control target key start
LH: loop header
LB: loop body
LE: loop exit
PB: predicated region body
PF: predicated region fallthrough
CT: control target
= control target key end

     0   :  { %s894_s17 = smov [#allocation4]   ;;  %s1491_s0 = inlined_call_operand.vmem [shape: s32[2], index: 0, kind: input, shape index: {}]   ;;  %s1492_s1 = inlined_call_operand.<no memory space> [shape: f32[1,1], index: 1, kind: input, shape index: {}]   ;;  %s1493_s2 = inlined_call_operand.vmem [shape: f32[2,2048], index: 2, kind: input, shape index: {}]   ;;  %s1494_s3 = inlined_call_operand.hbm [shape: f32[2,2048], index: 3, kind: output, shape index: {}]  }
   0x1   :  { %s9_s14 = sshll.u32 %s1491_s0, 4  ;;  %13 = sst [smem:[#allocation5]] %s1492_s1  ;;  %s10_s14 = int_to_ptr.vmem [resolvable:$true] %s9_s14 }
   0x2   :  { %12 = dma.vmem_to_smem %s10_s14, 16, %s894_s17, [#allocation3] }
   0x3   :  { %872 = dma.done.wait [#allocation3], 16 }
   0x4   :  { %873 = vsyncadd [#allocation3], 4294967280 }
   0x5   :  { %16 = sfence }
   0x6   :  { %17 = vsyncpa [#allocation7], 0 }
   0x7   :  { %19 = vsyncpa [#allocation7 + $0x1], 0  ;;  %s921_s18 = smov 0   ;;  %s923_s19 = smov 0  }
   0x8   :  { %s925_s20 = smov 0   ;;  %s927_s21 = smov 0  }
   0x9 LB: > { %s942_s0 = sadd.s32 4294967295, %s892_s21   ;;  %s753_s1 = sadd.s32 4294967294, %s892_s21   ;;  %s892_s21 = sphi %s927_s21, %s1506_s21   ;;  %s888_s20 = sphi %s925_s20, %s1505_s20   ;;  %s884_s19 = sphi %s923_s19, %s1504_s19   ;;  %s880_s18 = sphi %s921_s18, %s1503_s18  }
   0xa   : > { %s946_s22 = sadd.s32 1, %s892_s21   ;;  %p85_p0 = scmp.gt.s32.totalorder %s942_s0, 0 }
   0xb   : > { %s755_s23 = sadd.s32 4294967295, %s946_s22  ;;  %s93_s24 = sadd.s32 1, %s888_s20 }
   0xc   : > { %s86_s25 = scalar_select %p85_p0, %s942_s0, 0 }
   0xd   : > { %p88_p1 = scmp.gt.s32.totalorder %s755_s23, 0  ;;  %p103_p2 = scmp.ne.s32.totalorder %s888_s20, %s884_s19 }
   0xe   : > { %p104_p3 = scmp.eq.s32.totalorder %s942_s0, 1  ;;  %p109_p4 = scmp.ne.s32.totalorder %s884_s19, %s880_s18 }
   0xf   : > { %s1508_s23 = smov (!%p88_p1, %s755_s23), 0  ;;  %p110_p6 = scmp.eq.s32.totalorder %s753_s1, 1 }
  0x10   : > { %p957_p5 = por %p104_p3, %p103_p2  ;;  %s90_s27 = ssub.s32 %s86_s25, %s1508_s23 }
  0x11   : > { %p758_p7 = scmp.ge.s32.totalorder %s892_s21, 1  ;;  %p91_p8 = scmp.eq.s32.totalorder %s90_s27, 0 }
  0x12   : > { %p962_p9 = por %p110_p6, %p109_p4  ;;  %p148_p10 = scmp.lt.s32.totalorder %s892_s21, 3 }
  0x13   : > { %s968_s29 = scalar_select %p91_p8, %s888_s20, %s93_s24  }
  0x14   : > { %p149_p11 = pnand %p758_p7, %p148_p10 }
  0x15   : > { %s171_s30 = sand.u32 (!%p149_p11), 1, %s884_s19   ;;  %s174_s4 = sld [smem:[#allocation4]] (!%p149_p11) }
  0x16   : > { %152 = sbr.rel (%p149_p11) target bundleno = 267 (0x10b), region = 28  ;;  %s759_s5 = sshll.u32 (!%p149_p11), %s171_s30, 5 }
  0x17   : > { %s979_s12 = scalar_lea.vmem (!%p149_p11), [#allocation6], %s759_s5  ;;  %p762_p0 = scmp.le.s32.totalorder (!%p149_p11), %s942_s0, 0 }
  0x1b   : > { %s175_s6 = sadd.s32 %s942_s0, %s174_s4  ;;  %s982_s13 = sld [smem:[#allocation4 + $0x1]] (!%p762_p0) }
  0x1c   : > { %p176_p12 = scmp.lt.s32.totalorder %s175_s6, 0  ;;  %s196_s14 = sld [smem:[#allocation4]] (!%p762_p0) }
  0x1d   : > { %s767_s15 = sadd.s32 (!%p762_p0), 4294967295, %s942_s0 }
  0x1e   : > { %s1510_s6 = smov (!%p176_p12, %s175_s6), 0 }
  0x1f   : > { %s760_s7 = sshll.u32 %s1510_s6, 4 }
  0x20   : > { %p179_p13 = scmp.lt.s32.totalorder %s760_s7, 15  ;;  %195 = sbr.rel (%p762_p0) target bundleno = 248 (0xf8), region = 32 }
  0x21   : > { %s371_s16 = ssub.s32 (!%p762_p0), 2048, %s982_s13 }
  0x22   : > { %s1512_s7 = smov (!%p179_p13, %s760_s7), 15  ;;  %p372_p1 = scmp.lt.s32.totalorder (!%p762_p0), %s371_s16, 0 }
  0x23   : > { %s761_s8 = sshll.u32 %s1512_s7, 1  ;;  %s373_s17 = ssub.s32 (!%p762_p0), 0, %s371_s16 }
  0x24   : > { %s977_s11 = scalar_lea.vmem %s1493_s2, %s761_s8  ;;  %s764_s1 = smin.u32 (!%p762_p0), %s373_s17, %s371_s16 }
  0x25   : > { %v199_v0 = vld [vmem:[#allocation2 + $0x10] sm:$0xff]  ;;  %v207_v1 = vlaneseq  ;;  %v200_v2 = vld [vmem:[#allocation2] sm:$0xff]  ;;  %v201_v4 = vld [vmem:[#allocation2 + $0x18] sm:$0xff]  ;;  %s514_s23 = sadd.s32 %s767_s15, %s196_s14  ;;  %s375_s24 = sand.u32 2047, %s764_s1   ;;  %v1070_v37 = vstv %s982_s13 }
  0x26   : > { %277 = vst [vmem:[#allocation1] ss:$4 sm:$0xff] %v199_v0  ;;  %v202_v10 = vld [vmem:[#allocation2 + $0x8] sm:$0xff]  ;;  %s768_s25 = sshll.u32 %s514_s23, 11  ;;  %s376_s27 = ssub.s32 0, %s375_s24  ;;  %v203_v26 = vld [vmem:[%s977_s11] sm:$0xff] }
  0x27   : > { %279 = vst [vmem:[#allocation1 + $0x20] ss:$4 sm:$0xff] %v200_v2  ;;  %v984_v3 = vand.u32 127, %v207_v1  ;;  %s516_s4 = sadd.s32 %s768_s25, %s982_s13  ;;  %s1514_s27 = smov (!%p372_p1, %s376_s27), %s375_s24  ;;  %v204_v34 = vld [vmem:[%s977_s11 + $0x8] sm:$0xff]  ;;  %v205_v44 = vld [vmem:[%s977_s11 + $0x10] sm:$0xff]  ;;  %v206_v54 = vld [vmem:[%s977_s11 + $0x18] sm:$0xff] }
  0x28   : > { %v1013_v16 = vstv %s516_s4  ;;  %p766_p2 = scmp.lt.s32.totalorder %s1514_s27, 0  ;;  %s382_s5 = sadd.s32 2048, %s1514_s27 }
  0x29   : > { %v989_v5 = vadd.s32 256, %v984_v3  ;;  %v998_v11 = vadd.s32 384, %v984_v3  ;;  %v1001_v12 = vadd.s32 128, %v984_v3  ;;  %v1005_v13 = vadd.s32 896, %v984_v3  ;;  %s1197_s15 = sld [smem:[#allocation5]] }
  0x2a   : > { %v1010_v15 = vadd.s32 768, %v984_v3  ;;  %v212_v25 = vadd.s32 512, %v984_v3  ;;  %s1516_s5 = smov (!%p766_p2, %s382_s5), %s1514_s27  ;;  %v1049_v28 = vadd.s32 1280, %v984_v3  ;;  %v1060_v33 = vadd.s32 1152, %v984_v3 }
  0x2b   : > { %v1021_v19 = vadd.s32 %v1013_v16, %v989_v5  ;;  %v1025_v20 = vadd.s32 %v1013_v16, %v998_v11  ;;  %v1029_v21 = vadd.s32 %v1013_v16, %v1001_v12  ;;  %v1035_v23 = vadd.s32 %v1013_v16, %v1005_v13  ;;  %s384_s6 = sand.u32 2047, %s1516_s5  }
  0x2c   : > { %v1039_v24 = vadd.s32 %v1013_v16, %v1010_v15  ;;  %v1046_v27 = vadd.s32 %v1013_v16, %v212_v25  ;;  %v1066_v35 = vadd.s32 %v1013_v16, %v1049_v28  ;;  %v213_v36 = vadd.s32 640, %v984_v3  ;;  %s1093_s7 = sand.u32 127, %s384_s6   ;;  %s386_s8 = sshrl.u32 %s384_s6, 7 }
  0x2d   : > { %v991_v6 = vld.sshfl [vmem:[#allocation1] sm:$0xff pattern:$0x73625140]  ;;  %v993_v7 = vld.sshfl [vmem:[#allocation1 + $0x8] sm:$0xff pattern:$0x73625140]  ;;  %v1078_v40 = vadd.s32 %v1013_v16, %v1060_v33  ;;  %vm227_vm0 = vcmp.ge.s32.totalorder %v989_v5, %v1070_v37  ;;  %vm225_vm1 = vcmp.ge.s32.totalorder %v984_v3, %v1070_v37  ;;  %vm229_vm2 = vcmp.ge.s32.totalorder %v212_v25, %v1070_v37 }
  0x2e   : > { %v282_v8 = vld.sshfl [vmem:[#allocation1 + $0x10] sm:$0xff pattern:$0x73625140]  ;;  %v995_v9 = vld.sshfl [vmem:[#allocation1 + $0x18] sm:$0xff pattern:$0x73625140]  ;;  %v1085_v43 = vadd.s32 %v1013_v16, %v213_v36  ;;  %vm228_vm3 = vcmp.ge.s32.totalorder %v998_v11, %v1070_v37  ;;  %vm226_vm4 = vcmp.ge.s32.totalorder %v1001_v12, %v1070_v37  ;;  %vm230_vm5 = vcmp.ge.s32.totalorder %v213_v36, %v1070_v37 }
  0x2f   : > { %288 = vst [vmem:[#allocation1] ss:$4 sm:$0xff] %v201_v4  ;;  %v1007_v14 = vld.sshfl [vmem:[#allocation1 + $0x20] sm:$0xff pattern:$0x73625140]  ;;  %v1097_v45 = vadd.s32 1664, %v984_v3  ;;  %vm232_vm6 = vcmp.ge.s32.totalorder %v1005_v13, %v1070_v37  ;;  %vm231_vm7 = vcmp.ge.s32.totalorder %v1010_v15, %v1070_v37  ;;  %vm235_vm9 = vcmp.ge.s32.totalorder %v1049_v28, %v1070_v37 }
  0x30   : > { %v1015_v17 = vld.sshfl [vmem:[#allocation1 + $0x28] sm:$0xff pattern:$0x73625140]  ;;  %v1017_v18 = vld.sshfl [vmem:[#allocation1 + $0x30] sm:$0xff pattern:$0x73625140]  ;;  %vm234_vm10 = vcmp.ge.s32.totalorder %v1060_v33, %v1070_v37 }
  0x31   : > { %v1031_v22 = vld.sshfl [vmem:[#allocation1 + $0x38] sm:$0xff pattern:$0x73625140]  ;;  %v1100_v46 = vadd.s32 1536, %v984_v3  ;;  %v1107_v53 = vadd.s32 %v1013_v16, %v1097_v45  ;;  %v216_v56 = vadd.s32 1024, %v984_v3  ;;  %v223_v1 = vadd.s32 1920, %v984_v3 }
  0x32   : > { %289 = vst [vmem:[#allocation1 + $0x20] ss:$4 sm:$0xff] %v202_v10  ;;  %v219_v4 = vadd.s32 1408, %v984_v3  ;;  %v222_v5 = vadd.s32 1792, %v984_v3  ;;  %vm238_vm12 = vcmp.ge.s32.totalorder %v1097_v45, %v1070_v37  ;;  %s437_s9 = sand.u32 1, %s386_s8  ;;  %s456_s10 = sand.u32 2, %s386_s8 }
  0x33   : > { %v1113_v55 = vadd.s32 %v1013_v16, %v1100_v46  ;;  %v1121_v61 = vadd.s32 %v1013_v16, %v216_v56  ;;  %v1132_v2 = vadd.s32 %v1013_v16, %v223_v1  ;;  %vm233_vm8 = vcmp.ge.s32.totalorder %v216_v56, %v1070_v37  ;;  %s475_s13 = sand.u32 4, %s386_s8  ;;  %s494_s14 = sand.u32 8, %s386_s8 }
  0x34   : > { %vm236_vm11 = vcmp.ge.s32.totalorder %v219_v4, %v1070_v37  ;;  %vm237_vm13 = vcmp.ge.s32.totalorder %v1100_v46, %v1070_v37  ;;  %vm239_vm14 = vcmp.ge.s32.totalorder %v222_v5, %v1070_v37  ;;  %vm240_vm15 = vcmp.ge.s32.totalorder %v223_v1, %v1070_v37 }
  0x36   : > { %v1051_v29 = vld.sshfl [vmem:[#allocation1] sm:$0xff pattern:$0x73625140]  ;;  %v1053_v30 = vld.sshfl [vmem:[#allocation1 + $0x8] sm:$0xff pattern:$0x73625140] }
  0x37   : > { %v1055_v31 = vld.sshfl [vmem:[#allocation1 + $0x10] sm:$0xff pattern:$0x73625140]  ;;  %v1057_v32 = vld.sshfl [vmem:[#allocation1 + $0x18] sm:$0xff pattern:$0x73625140] }
  0x38   : > { %318 = vst [vmem:[#allocation1] ss:$4 sm:$0xff] %v203_v26 }
  0x39   : > { %v1072_v38 = vld.sshfl [vmem:[#allocation1 + $0x20] sm:$0xff pattern:$0x73625140]  ;;  %v1074_v39 = vld.sshfl [vmem:[#allocation1 + $0x28] sm:$0xff pattern:$0x73625140] }
  0x3a   : > { %v1080_v41 = vld.sshfl [vmem:[#allocation1 + $0x30] sm:$0xff pattern:$0x73625140]  ;;  %v1082_v42 = vld.sshfl [vmem:[#allocation1 + $0x38] sm:$0xff pattern:$0x73625140] }
  0x3b   : > { %320 = vst [vmem:[#allocation1 + $0x20] ss:$4 sm:$0xff] %v204_v34 }
  0x3f   : > { %v323_v47 = vld.sshfl [vmem:[#allocation1 + $0x10] sm:$0xff pattern:$0x73625140]  ;;  %v321_v48 = vld.sshfl [vmem:[#allocation1] sm:$0xff pattern:$0x73625140] }
  0x40   : > { %v357_v49 = vsel %vm227_vm0, %v282_v8, %v323_v47  ;;  %v355_v50 = vsel %vm225_vm1, %v991_v6, %v321_v48  ;;  %v324_v51 = vld.sshfl [vmem:[#allocation1 + $0x18] sm:$0xff pattern:$0x73625140]  ;;  %v322_v52 = vld.sshfl [vmem:[#allocation1 + $0x8] sm:$0xff pattern:$0x73625140]  ;;  %v1145_v8 = vadd.s32 %v1013_v16, %v222_v5 }
  0x41   : > { %391 = vrot.lane.b32.xlu1 %v357_v49, %s1093_s7  ;;  %387 = vrot.lane.b32.xlu0 %v355_v50, %s1093_s7  ;;  %329 = vst [vmem:[#allocation1] ss:$4 sm:$0xff] %v205_v44  ;;  %v358_v63 = vsel %vm228_vm3, %v995_v9, %v324_v51  ;;  %v356_v0 = vsel %vm226_vm4, %v993_v7, %v322_v52  ;;  %v1185_v50 = vstv %s437_s9  ;;  %v1192_v52 = vstv %s456_s10 }
  0x42   : > { %v328_v57 = vld.sshfl [vmem:[#allocation1 + $0x38] sm:$0xff pattern:$0x73625140]  ;;  %v327_v58 = vld.sshfl [vmem:[#allocation1 + $0x30] sm:$0xff pattern:$0x73625140]  ;;  %v1142_v7 = vadd.s32 %v1013_v16, %v219_v4 }
  0x43   : > { %v325_v59 = vld.sshfl [vmem:[#allocation1 + $0x20] sm:$0xff pattern:$0x73625140]  ;;  %v326_v60 = vld.sshfl [vmem:[#allocation1 + $0x28] sm:$0xff pattern:$0x73625140]  ;;  %v362_v9 = vsel %vm232_vm6, %v1031_v22, %v328_v57  ;;  %v361_v10 = vsel %vm231_vm7, %v1017_v18, %v327_v58 }
  0x44   : > { %v359_v62 = vsel %vm229_vm2, %v1007_v14, %v325_v59  ;;  %330 = vst [vmem:[#allocation1 + $0x20] ss:$4 sm:$0xff] %v206_v54  ;;  %v360_v6 = vsel %vm230_vm5, %v1015_v17, %v326_v60  ;;  %v1194_v54 = vstv %s475_s13  ;;  %vm439_vm1 = vcmp.ne.s32.totalorder %v1185_v50, 0 }
  0x45   : > { %395 = vrot.lane.b32.xlu2 %v359_v62, %s1093_s7  ;;  %vm458_vm2 = vcmp.ne.s32.totalorder %v1192_v52, 0  ;;  %vm477_vm3 = vcmp.ne.s32.totalorder %v1194_v54, 0  ;;  %vm535_vm5 = vcmp.lt.s32.totalorder %v1029_v21, 2048  ;;  %vm536_vm7 = vcmp.lt.s32.totalorder %v1021_v19, 2048 }
  0x48   : > { %v331_v11 = vld.sshfl [vmem:[#allocation1] sm:$0xff pattern:$0x73625140]  ;;  %v333_v12 = vld.sshfl [vmem:[#allocation1 + $0x10] sm:$0xff pattern:$0x73625140] }
  0x49   : > { %393 = vrot.lane.b32.xlu1 %v358_v63, %s1093_s7  ;;  %389 = vrot.lane.b32.xlu0 %v356_v0, %s1093_s7  ;;  %v332_v13 = vld.sshfl [vmem:[#allocation1 + $0x8] sm:$0xff pattern:$0x73625140]  ;;  %v363_v14 = vsel %vm233_vm8, %v1051_v29, %v331_v11  ;;  %v365_v15 = vsel %vm235_vm9, %v1055_v31, %v333_v12  ;;  %v334_v18 = vld.sshfl [vmem:[#allocation1 + $0x18] sm:$0xff pattern:$0x73625140]  ;;  %v1211_v63 = vstv %s494_s14 }
  0x4a   : > { %v364_v17 = vsel %vm234_vm10, %v1053_v30, %v332_v13  ;;  %v366_v26 = vsel %vm236_vm11, %v1057_v32, %v334_v18  ;;  %vm496_vm4 = vcmp.ne.s32.totalorder %v1211_v63, 0  ;;  %vm537_vm8 = vcmp.lt.s32.totalorder %v1025_v20, 2048 }
  0x4b   : > { %v336_v22 = vld.sshfl [vmem:[#allocation1 + $0x28] sm:$0xff pattern:$0x73625140]  ;;  %v335_v25 = vld.sshfl [vmem:[#allocation1 + $0x20] sm:$0xff pattern:$0x73625140] }
  0x4c   : > { %v368_v28 = vsel %vm238_vm12, %v1074_v39, %v336_v22  ;;  %v367_v29 = vsel %vm237_vm13, %v1072_v38, %v335_v25  ;;  %v337_v30 = vld.sshfl [vmem:[#allocation1 + $0x30] sm:$0xff pattern:$0x73625140]  ;;  %v338_v31 = vld.sshfl [vmem:[#allocation1 + $0x38] sm:$0xff pattern:$0x73625140] }
  0x4d   : > { %397 = vrot.lane.b32.xlu2 %v360_v6, %s1093_s7  ;;  %v369_v33 = vsel %vm239_vm14, %v1080_v41, %v337_v30  ;;  %v370_v34 = vsel %vm240_vm15, %v1082_v42, %v338_v31  ;;  %v419_v41 = vstv %s1093_s7  ;;  %vm538_vm9 = vcmp.lt.s32.totalorder %v1046_v27, 2048 }
  0x4e   : > { %vm1188_vm0 = vcmp.lt.s32.totalorder %v984_v3, %v419_v41  ;;  %vm539_vm10 = vcmp.lt.s32.totalorder %v1085_v43, 2048  ;;  %vm541_vm11 = vcmp.lt.s32.totalorder %v1035_v23, 2048  ;;  %vm540_vm12 = vcmp.lt.s32.totalorder %v1039_v24, 2048 }
  0x4f   : > { %vm543_vm13 = vcmp.lt.s32.totalorder %v1078_v40, 2048  ;;  %vm542_vm14 = vcmp.lt.s32.totalorder %v1121_v61, 2048  ;;  %vm645_vm15 = vcmask 1045508  }
  0x51   : > { %401 = vrot.lane.b32.xlu1 %v362_v9, %s1093_s7  ;;  %399 = vrot.lane.b32.xlu0 %v361_v10, %s1093_s7 }
  0x55   : > { %403 = vrot.lane.b32.xlu2 %v363_v14, %s1093_s7 }
  0x59   : > { %407 = vrot.lane.b32.xlu1 %v365_v15, %s1093_s7  ;;  %405 = vrot.lane.b32.xlu0 %v364_v17, %s1093_s7 }
  0x5d   : > { %409 = vrot.lane.b32.xlu2 %v366_v26, %s1093_s7 }
  0x61   : > { %413 = vrot.lane.b32.xlu1 %v368_v28, %s1093_s7  ;;  %411 = vrot.lane.b32.xlu0 %v367_v29, %s1093_s7 }
  0x65   : > { %415 = vrot.lane.b32.xlu2 %v369_v33, %s1093_s7 }
  0x69   : > { %417 = vrot.lane.b32.xlu0 %v370_v34, %s1093_s7 }
  0x9f   : > { %v396_v32 = vpop.permute.xlu2 %395 }
  0xa7   : > { %v398_v36 = vpop.permute.xlu2 %397 }
  0xa8   : > { %v431_v56 = vsel %vm1188_vm0, %v396_v32, %v398_v36 }
  0xaf   : > { %v404_v46 = vpop.permute.xlu2 %403 }
  0xb3   : > { %v392_v38 = vpop.permute.xlu1 %391  ;;  %v1180_v39 = vpop.permute.xlu0 %387 }
  0xb7   : > { %v410_v37 = vpop.permute.xlu2 %409 }
  0xbb   : > { %v394_v44 = vpop.permute.xlu1 %393  ;;  %v390_v45 = vpop.permute.xlu0 %389 }
  0xbc   : > { %v432_v57 = vsel %vm1188_vm0, %v394_v44, %v396_v32  ;;  %v433_v58 = vsel %vm1188_vm0, %v392_v38, %v394_v44  ;;  %v434_v10 = vsel %vm1188_vm0, %v390_v45, %v392_v38  ;;  %v435_v11 = vsel %vm1188_vm0, %v1180_v39, %v390_v45 }
  0xbd   : > { %v444_v6 = vsel %vm439_vm1, %v433_v58, %v432_v57  ;;  %v445_v9 = vsel %vm439_vm1, %v432_v57, %v431_v56  ;;  %v442_v29 = vsel %vm439_vm1, %v435_v11, %v434_v10  ;;  %v443_v30 = vsel %vm439_vm1, %v434_v10, %v433_v58 }
  0xbe   : > { %v1286_v57 = vadd.s32 %v1013_v16, %v984_v3 }
  0xbf   : > { %v416_v62 = vpop.permute.xlu2 %415 }
  0xc0   : > { %vm534_vm6 = vcmp.lt.s32.totalorder %v1286_v57, 2048 }
  0xc3   : > { %v402_v47 = vpop.permute.xlu1 %401  ;;  %v400_v48 = vpop.permute.xlu0 %399 }
  0xc4   : > { %v428_v59 = vsel %vm1188_vm0, %v402_v47, %v404_v46  ;;  %v430_v60 = vsel %vm1188_vm0, %v398_v36, %v400_v48  ;;  %v429_v0 = vsel %vm1188_vm0, %v400_v48, %v402_v47  ;;  %v1260_v36 = vstv %s1197_s15 }
  0xc5   : > { %v446_v14 = vsel %vm439_vm1, %v431_v56, %v430_v60  ;;  %v448_v22 = vsel %vm439_vm1, %v429_v0, %v428_v59  ;;  %v447_v34 = vsel %vm439_vm1, %v430_v60, %v429_v0  ;;  %v463_v47 = vsel %vm458_vm2, %v442_v29, %v444_v6 }
  0xc6   : > { %v467_v38 = vsel %vm458_vm2, %v446_v14, %v448_v22  ;;  %v464_v48 = vsel %vm458_vm2, %v443_v30, %v445_v9 }
  0xc7   : > { %v486_v58 = vsel %vm477_vm3, %v463_v47, %v467_v38 }
  0xcb   : > { %v408_v42 = vpop.permute.xlu1 %407  ;;  %v406_v49 = vpop.permute.xlu0 %405 }
  0xcc   : > { %v425_v1 = vsel %vm1188_vm0, %v408_v42, %v410_v37  ;;  %v426_v4 = vsel %vm1188_vm0, %v406_v49, %v408_v42  ;;  %v427_v5 = vsel %vm1188_vm0, %v404_v46, %v406_v49  ;;  %v465_v42 = vsel %vm458_vm2, %v444_v6, %v446_v14 }
  0xcd   : > { %v449_v25 = vsel %vm439_vm1, %v428_v59, %v427_v5  ;;  %v450_v26 = vsel %vm439_vm1, %v427_v5, %v426_v4  ;;  %v451_v28 = vsel %vm439_vm1, %v426_v4, %v425_v1  ;;  %v466_v49 = vsel %vm458_vm2, %v445_v9, %v447_v34 }
  0xce   : > { %v468_v44 = vsel %vm458_vm2, %v447_v34, %v449_v25  ;;  %v469_v45 = vsel %vm458_vm2, %v448_v22, %v450_v26  ;;  %v470_v46 = vsel %vm458_vm2, %v449_v25, %v451_v28 }
  0xcf   : > { %v487_v59 = vsel %vm477_vm3, %v464_v48, %v468_v44  ;;  %v488_v60 = vsel %vm477_vm3, %v465_v42, %v469_v45  ;;  %v489_v0 = vsel %vm477_vm3, %v466_v49, %v470_v46 }
  0xd3   : > { %v414_v12 = vpop.permute.xlu1 %413  ;;  %v412_v13 = vpop.permute.xlu0 %411 }
  0xd4   : > { %v422_v15 = vsel %vm1188_vm0, %v414_v12, %v416_v62  ;;  %v423_v17 = vsel %vm1188_vm0, %v412_v13, %v414_v12  ;;  %v424_v18 = vsel %vm1188_vm0, %v410_v37, %v412_v13 }
  0xd5   : > { %v452_v31 = vsel %vm439_vm1, %v425_v1, %v424_v18  ;;  %v453_v33 = vsel %vm439_vm1, %v424_v18, %v423_v17  ;;  %v454_v32 = vsel %vm439_vm1, %v423_v17, %v422_v15 }
  0xd6   : > { %v471_v37 = vsel %vm458_vm2, %v450_v26, %v452_v31  ;;  %v472_v41 = vsel %vm458_vm2, %v451_v28, %v453_v33  ;;  %v473_v56 = vsel %vm458_vm2, %v452_v31, %v454_v32 }
  0xd7   : > { %v490_v4 = vsel %vm477_vm3, %v467_v38, %v471_v37  ;;  %v491_v3 = vsel %vm477_vm3, %v468_v44, %v472_v41  ;;  %v492_v6 = vsel %vm477_vm3, %v469_v45, %v473_v56 }
  0xdb   : > { %v418_v1 = vpop.permute.xlu0 %417 }
  0xdc   : > { %v421_v16 = vsel %vm1188_vm0, %v416_v62, %v418_v1  ;;  %v436_v5 = vsel %vm1188_vm0, %v418_v1, %v1180_v39  ;;  %vm647_vm0 = vcmask 1043456  }
  0xdd   : > { %v440_v9 = vsel %vm439_vm1, %v421_v16, %v436_v5  ;;  %v441_v10 = vsel %vm439_vm1, %v436_v5, %v435_v11  ;;  %v455_v12 = vsel %vm439_vm1, %v422_v15, %v421_v16  ;;  %vm546_vm1 = vcmp.lt.s32.totalorder %v1113_v55, 2048 }
  0xde   : > { %v459_v62 = vsel %vm458_vm2, %v454_v32, %v440_v9  ;;  %v460_v39 = vsel %vm458_vm2, %v455_v12, %v441_v10  ;;  %v461_v51 = vsel %vm458_vm2, %v440_v9, %v442_v29  ;;  %v462_v13 = vsel %vm458_vm2, %v441_v10, %v443_v30 }
  0xdf   : > { %v474_v50 = vsel %vm458_vm2, %v453_v33, %v455_v12  ;;  %v478_v11 = vsel %vm477_vm3, %v471_v37, %v459_v62  ;;  %v479_v14 = vsel %vm477_vm3, %v472_v41, %v460_v39  ;;  %v480_v15 = vsel %vm477_vm3, %v473_v56, %v461_v51 }
  0xe0   : > { %v481_v52 = vsel %vm477_vm3, %v474_v50, %v462_v13  ;;  %v482_v17 = vsel %vm477_vm3, %v459_v62, %v463_v47  ;;  %v483_v18 = vsel %vm477_vm3, %v460_v39, %v464_v48  ;;  %v484_v22 = vsel %vm477_vm3, %v461_v51, %v465_v42 }
  0xe1   : > { %vm545_vm2 = vcmp.lt.s32.totalorder %v1142_v7, 2048  ;;  %v485_v25 = vsel %vm477_vm3, %v462_v13, %v466_v49  ;;  %v493_v26 = vsel %vm477_vm3, %v470_v46, %v474_v50  ;;  %v497_v28 = vsel %vm496_vm4, %v486_v58, %v478_v11 }
  0xe2   : > { %v498_v29 = vsel %vm496_vm4, %v487_v59, %v479_v14  ;;  %v499_v30 = vsel %vm496_vm4, %v488_v60, %v480_v15  ;;  %v500_v31 = vsel %vm496_vm4, %v489_v0, %v481_v52  ;;  %v501_v54 = vsel %vm496_vm4, %v490_v4, %v482_v17 }
  0xe3   : > { %v502_v33 = vsel %vm496_vm4, %v491_v3, %v483_v18  ;;  %v503_v34 = vsel %vm496_vm4, %v492_v6, %v484_v22  ;;  %v504_v32 = vsel %vm496_vm4, %v493_v26, %v485_v25  ;;  %v505_v38 = vsel %vm496_vm4, %v478_v11, %v486_v58 }
  0xe4   : > { %v506_v44 = vsel %vm496_vm4, %v479_v14, %v487_v59  ;;  %v507_v45 = vsel %vm496_vm4, %v480_v15, %v488_v60  ;;  %v508_v46 = vsel %vm496_vm4, %v481_v52, %v489_v0  ;;  %v509_v47 = vsel %vm496_vm4, %v482_v17, %v490_v4 }
  0xe5   : > { %v510_v48 = vsel %vm496_vm4, %v483_v18, %v491_v3  ;;  %vm643_vm3 = vcmask 1041408   ;;  %v511_v37 = vsel %vm496_vm4, %v484_v22, %v492_v6  ;;  %v512_v41 = vsel %vm496_vm4, %v485_v25, %v493_v26 }
  0xe6   : > { %v551_v42 = vmul.f32 %v1260_v36, %v497_v28  ;;  %v552_v49 = vmul.f32 %v1260_v36, %v498_v29  ;;  %v553_v56 = vmul.f32 %v1260_v36, %v499_v30  ;;  %v554_v58 = vmul.f32 %v1260_v36, %v500_v31 }
  0xe7   : > { %v555_v59 = vmul.f32 %v1260_v36, %v501_v54  ;;  %v556_v60 = vmul.f32 %v1260_v36, %v502_v33  ;;  %v557_v0 = vmul.f32 %v1260_v36, %v503_v34  ;;  %v558_v1 = vmul.f32 %v1260_v36, %v504_v32 }
  0xe8   : > { %v559_v63 = vmul.f32 %v1260_v36, %v505_v38  ;;  %v560_v4 = vmul.f32 %v1260_v36, %v506_v44  ;;  %v561_v3 = vmul.f32 %v1260_v36, %v507_v45  ;;  %v562_v16 = vmul.f32 %v1260_v36, %v508_v46 }
  0xe9   : > { %v563_v5 = vmul.f32 %v1260_v36, %v509_v47  ;;  %v564_v6 = vmul.f32 %v1260_v36, %v510_v48  ;;  %v565_v9 = vmul.f32 %v1260_v36, %v511_v37  ;;  %v566_v10 = vmul.f32 %v1260_v36, %v512_v41 }
  0xea   : > { %v599_v12 = vsel %vm534_vm6, %v551_v42, 0.0  ;;  %v600_v62 = vsel %vm535_vm5, %v552_v49, 0.0  ;;  %v601_v39 = vsel %vm536_vm7, %v553_v56, 0.0  ;;  %v602_v51 = vsel %vm537_vm8, %v554_v58, 0.0 }
  0xeb   : > { %v603_v13 = vsel %vm538_vm9, %v555_v59, 0.0  ;;  %v604_v50 = vsel %vm539_vm10, %v556_v60, 0.0  ;;  %v605_v36 = vsel %vm540_vm12, %v557_v0, 0.0  ;;  %v606_v57 = vsel %vm541_vm11, %v558_v1, 0.0 }
  0xec   : > { %v607_v21 = vsel %vm542_vm14, %v559_v63, 0.0  ;;  %v608_v19 = vsel %vm543_vm13, %v560_v4, 0.0  ;;  %vm1499_vm4 = vcmp.lt.s32.totalorder %v1066_v35, 2048  ;;  %v610_v27 = vsel %vm545_vm2, %v562_v16, 0.0 }
  0xed   : > { %v609_v20 = vsel %vm1499_vm4, %v561_v3, 0.0  ;;  %v611_v43 = vsel %vm546_vm1, %v563_v5, 0.0  ;;  %vm1500_vm5 = vcmp.lt.s32.totalorder %v1107_v53, 2048  ;;  %vm1501_vm6 = vcmp.lt.s32.totalorder %v1145_v8, 2048 }
  0xee   : > { %v612_v24 = vsel %vm1500_vm5, %v564_v6, 0.0  ;;  %v613_v23 = vsel %vm1501_vm6, %v565_v9, 0.0  ;;  %vm1502_vm7 = vcmp.lt.s32.totalorder %v1132_v2, 2048  ;;  %v631_v40 = vrot.slane %v600_v62, 6 }
  0xef   : > { %v614_v61 = vsel %vm1502_vm7, %v566_v10, 0.0  ;;  %v632_v11 = vrot.slane %v601_v39, 4  ;;  %v633_v14 = vrot.slane %v602_v51, 2  ;;  %v634_v35 = vrot.slane %v604_v50, 6 }
  0xf0   : > { %v635_v15 = vrot.slane %v605_v36, 4  ;;  %v636_v52 = vrot.slane %v606_v57, 2  ;;  %v637_v7 = vrot.slane %v608_v19, 6  ;;  %v638_v17 = vrot.slane %v609_v20, 4 }
  0xf1   : > { %v639_v55 = vrot.slane %v610_v27, 2  ;;  %v640_v18 = vrot.slane %v612_v24, 6  ;;  %v641_v53 = vrot.slane %v613_v23, 4  ;;  %v642_v22 = vrot.slane %v614_v61, 2 }
  0xf2   : > { %v644_v8 = vsel %vm643_vm3, %v599_v12, %v631_v40  ;;  %v646_v2 = vsel %vm645_vm15, %v632_v11, %v633_v14  ;;  %v649_v26 = vsel %vm643_vm3, %v603_v13, %v634_v35  ;;  %v650_v28 = vsel %vm645_vm15, %v635_v15, %v636_v52 }
  0xf3   : > { %v648_v25 = vsel %vm647_vm0, %v644_v8, %v646_v2  ;;  %v652_v29 = vsel %vm643_vm3, %v607_v21, %v637_v7  ;;  %v651_v30 = vsel %vm647_vm0, %v649_v26, %v650_v28  ;;  %v653_v31 = vsel %vm645_vm15, %v638_v17, %v639_v55 }
  0xf4   : > { %v655_v54 = vsel %vm643_vm3, %v611_v43, %v640_v18  ;;  %v656_v33 = vsel %vm645_vm15, %v641_v53, %v642_v22  ;;  %662 = vst [vmem:[%s979_s12] sm:$0xff] %v648_v25  ;;  %v654_v34 = vsel %vm647_vm0, %v652_v29, %v653_v31 }
  0xf5   : > { %v657_v32 = vsel %vm647_vm0, %v655_v54, %v656_v33  ;;  %663 = vst [vmem:[%s979_s12 + $0x8] sm:$0xff] %v651_v30 }
  0xf6   : > { %664 = vst [vmem:[%s979_s12 + $0x10] sm:$0xff] %v654_v34 }
  0xf7   : > { %665 = vst [vmem:[%s979_s12 + $0x18] sm:$0xff] %v657_v32 }
  0xf8 PF: > { %v666_v38 = vld [vmem:[%s977_s11] sm:$0xff]  ;;  %v667_v44 = vld [vmem:[%s977_s11 + $0x8] sm:$0xff]  ;;  %v668_v45 = vld [vmem:[%s977_s11 + $0x10] sm:$0xff]  ;;  %s770_s16 = sadd.s32 4294967295, %s942_s0  ;;  %s691_s17 = sshll.u32 %s979_s12, 4  ;;  %s692_s17 = int_to_ptr.vmem [resolvable:$true] %s691_s17 }
  0xf9   : > { %670 = vst [vmem:[#allocation2 + $0x10] sm:$0xff] %v666_v38  ;;  %v669_v46 = vld [vmem:[%s977_s11 + $0x18] sm:$0xff]  ;;  %p683_p3 = scmp.gt.s32.totalorder %s770_s16, 0  ;;  %s675_s4 = scalar_lea.sflag [#allocation7], %s171_s30 }
  0xfa   : > { %671 = vst [vmem:[#allocation2] sm:$0xff] %v667_v44  ;;  %s848_s6 = scalar_lea.hbm %s1494_s3, 32 }
  0xfb   : > { %672 = vst [vmem:[#allocation2 + $0x18] sm:$0xff] %v668_v45  ;;  %s1518_s16 = smov (!%p683_p3, %s770_s16), 0 }
  0xfc   : > { %673 = vst [vmem:[#allocation2 + $0x8] sm:$0xff] %v669_v46  ;;  %s775_s1 = sshll.u32 %s1518_s16, 5 }
  0xfd   : > { %s689_s25 = scalar_lea.hbm %s1494_s3, %s775_s1 }
  0xfe   : > { %s693_s27 = sshll.u32 %s689_s25, 4  ;;  %s694_s27 = int_to_ptr.hbm [resolvable:$true] %s693_s27 }
  0xff   : > { %s842_s0 = sshra.s32 %s694_s27, 4  ;;  %s843_s0 = int_to_ptr.hbm [resolvable:$true] %s842_s0 }
 0x100   : > { %s844_s11 = scalar_lea.hbm %s843_s0, 32  ;;  %p849_p8 = scmp.lt.s32.totalorder %s843_s0, %s1494_s3 }
 0x101   : > { %p845_p4 = scmp.ne.s32.totalorder %s843_s0, %s844_s11  ;;  %p850_p10 = scmp.lt.s32.totalorder %s848_s6, %s844_s11 }
 0x103   : > { %p846_p6 = pnand %p845_p4, %p957_p5  ;;  %p851_p11 = por %p850_p10, %p849_p8 }
 0x105   : > { %p847_p7 = pneg %p846_p6 }
 0x107   : > { %p852_p12 = pnand %p851_p11, %p847_p7 }
 0x109   : > { %855 = shalt.err (!%p852_p12)
}
 0x10a   : > { %776 = dma.vmem_to_hbm [thread:$0]  (%p957_p5), %s692_s17, 512, %s694_s27, %s675_s4  }
 0x10b PF: > { %p782_p13 = scmp.ge.s32.totalorder %s892_s21, 2  ;;  %s705_s30 = sand.u32 1, %s880_s18  }
 0x10c   : > { %s706_s9 = scalar_lea.sflag [#allocation7], %s705_s30 }
 0x10d   : > { %p779_p0 = pnand %p782_p13, %p962_p9 }
 0x10f   : > { %p780_p1 = pneg %p779_p0 }
 0x111   : > { %875 = dma.done.wait (%p780_p1), %s706_s9, 512  }
 0x112   : > { %877 = vsyncadd (%p780_p1), %s706_s9, 4294966784  ;;  %p22_p2 = scmp.ge.s32.totalorder %s946_s22, 4   ;;  %s1503_s18 = smov %s884_s19 }
 0x113   : > { %s1504_s19 = smov %s888_s20  ;;  %s1505_s20 = smov %s968_s29 }
 0x114   : > { %s1506_s21 = smov %s946_s22  ;;  %24 = sbr.rel (!%p22_p2) target bundleno = 9 (0x9), region = 69 }
 0x119   :  { %712 = vsyncpa [#allocation7], 1 }
 0x11a   :  { %714 = vsyncpa [#allocation7 + $0x1], 1 }

</bundles_post_ra>
